<compile_context>
chip_gen: v6e
topology: v6e:2x2x1
jax: 0.10.0
libtpu: 0.0.40
codegen_flags: <defaults>
</compile_context>

<pallas_src>
import math
from functools import partial

import jax
import jax.numpy as jnp
from jax.experimental import pallas as pl
from jax.experimental.pallas import tpu as pltpu

EPS = 1e-6
W_EPS = 1e-10
LANES = 128
_TILE_ROWS_TARGET = 8192              # 8192 rows x 128 lanes x 4 B = 4 MiB / input / step
_ACC_ROWS_TARGET = 32                 # ~4 vregs per f32 accumulator
_VMEM_LIMIT_BYTES = 40 * 1024 * 1024  # safe on v5e/v6e (128 MiB) and v7x (64 MiB)


def _lcm(a, b):
    return a * b // math.gcd(a, b)


def _gdl_sums_kernel(x_ref, t_ref, out_ref, *, acc_rows, tile_rows, n_rows,
                     n_tiles, needs_mask):
    """Accumulate lane-bucketed partial sums of (t, x, x*t) for one batch.

    x_ref/t_ref : (1, tile_rows, 128) VMEM tiles of the flattened input/target.
    out_ref     : (1, 3, acc_rows, 128) per-batch bucketed sums, resident
                  across the n (reduction) grid axis.
    """
    n = pl.program_id(1)

    @pl.when(n == 0)
    def _():
        out_ref[...] = jnp.zeros_like(out_ref)

    n_chunks = tile_rows // acc_rows

    def accumulate(masked):
        def body(i, carry):
            st, si, sp = carry
            off = pl.multiple_of(i * acc_rows, acc_rows)
            x = x_ref[0, pl.ds(off, acc_rows), :].astype(jnp.float32)
            t = t_ref[0, pl.ds(off, acc_rows), :].astype(jnp.float32)
            if masked:
                # Zero rows past the logical row count (partial last block).
                row = (n * tile_rows + off
                       + jax.lax.broadcasted_iota(jnp.int32, (acc_rows, LANES), 0))
                valid = row < n_rows
                x = jnp.where(valid, x, 0.0)
                t = jnp.where(valid, t, 0.0)
            return (st + t, si + x, sp + x * t)

        zero = jnp.zeros((acc_rows, LANES), jnp.float32)
        st, si, sp = jax.lax.fori_loop(0, n_chunks, body, (zero, zero, zero))
        out_ref[0, 0, :, :] += st
        out_ref[0, 1, :, :] += si
        out_ref[0, 2, :, :] += sp

    if needs_mask:
        # Unmasked hot path for all but the final grid step.
        @pl.when(n < n_tiles - 1)
        def _():
            accumulate(False)

        @pl.when(n == n_tiles - 1)
        def _():
            accumulate(True)
    else:
        accumulate(False)


def gdl_loss(inp, tgt):
    """inp, tgt: (B, W, H, C) arrays. Returns scalar f32 GDL loss."""
    assert inp.shape == tgt.shape and inp.ndim == 4
    B, W, H, C = inp.shape
    M = W * H * C
    itemsize = jnp.dtype(inp.dtype).itemsize

    # Sublane packing multiple for the native dtype (8 f32 / 16 bf16 / 32 int8):
    # inputs stay in native dtype through the DMA, upcast happens in-kernel.
    sub = 8 * max(1, 4 // itemsize)
    # Smallest row count whose 128-lane span covers a whole number of channel
    # periods AND is sublane-legal: lcm(sub, C / gcd(C, 128)).
    r_out = C // math.gcd(C, LANES)
    base = _lcm(sub, r_out)

    xf = jnp.reshape(inp, (B, M))
    tf = jnp.reshape(tgt, (B, M))

    n_rows = M // LANES
    main = n_rows * LANES if n_rows >= base else 0

    if main > 0:
        # Zero-copy reshape when M is 128-aligned; otherwise slice the aligned
        # prefix (the < 128-elem/batch remainder is handled below in JAX).
        # TODO(synk): a fully copy-free non-128-aligned path would need a
        # manual-DMA (pl.ANY) kernel; not worth it for a <128-element tail.
        x_main = xf if main == M else xf[:, :main]
        t_main = tf if main == M else tf[:, :main]
        x3 = jnp.reshape(x_main, (B, n_rows, LANES))
        t3 = jnp.reshape(t_main, (B, n_rows, LANES))

        tile_rows = min(n_rows, _TILE_ROWS_TARGET)
        tile_rows = max(base, (tile_rows // base) * base)
        n_tiles = pl.cdiv(n_rows, tile_rows)
        needs_mask = (n_rows % tile_rows) != 0

        # Accumulator height: multiple of `base`, divides tile_rows, ~32 rows.
        k = math.gcd(tile_rows // base, max(1, _ACC_ROWS_TARGET // base))
        acc_rows = base * k

        kernel = partial(_gdl_sums_kernel, acc_rows=acc_rows,
                         tile_rows=tile_rows, n_rows=n_rows,
                         n_tiles=n_tiles, needs_mask=needs_mask)

        cost = pl.CostEstimate(
            flops=4 * B * n_rows * LANES,
            transcendentals=0,
            bytes_accessed=2 * B * n_rows * LANES * itemsize
                           + B * 3 * acc_rows * LANES * 4,
        )

        sums = pl.pallas_call(
            kernel,
            out_shape=jax.ShapeDtypeStruct((B, 3, acc_rows, LANES), jnp.float32),
            grid_spec=pltpu.PrefetchScalarGridSpec(
                num_scalar_prefetch=0,
                grid=(B, n_tiles),
                in_specs=[
                    pl.BlockSpec((1, tile_rows, LANES), lambda b, n: (b, n, 0)),
                    pl.BlockSpec((1, tile_rows, LANES), lambda b, n: (b, n, 0)),
                ],
                out_specs=pl.BlockSpec((1, 3, acc_rows, LANES),
                                       lambda b, n: (b, 0, 0, 0)),
            ),
            compiler_params=pltpu.CompilerParams(
                dimension_semantics=("parallel", "arbitrary"),
                vmem_limit_bytes=_VMEM_LIMIT_BYTES,
            ),
            cost_estimate=cost,
        )(x3, t3)

        # Bucket (s, l) holds flat positions p === s*128 + l (mod acc_rows*128);
        # C divides acc_rows*128, so that bucket's channel is (s*128 + l) % C,
        # and a reshape + sum regroups buckets into per-(b, c) sums.
        per_bc = jnp.sum(
            jnp.reshape(sums, (B, 3, (acc_rows * LANES) // C, C)), axis=2)
        st, si, sp = per_bc[:, 0], per_bc[:, 1], per_bc[:, 2]
    else:
        st = si = sp = jnp.zeros((B, C), jnp.float32)

    if main < M:
        # Non-128-aligned remainder (< 128 elems/batch; whole input if tiny).
        xt = xf[:, main:].astype(jnp.float32)
        tt = tf[:, main:].astype(jnp.float32)
        ch = jnp.arange(main, M) % C
        onehot = (ch[:, None] == jnp.arange(C)[None, :]).astype(jnp.float32)
        st = st + tt @ onehot
        si = si + xt @ onehot
        sp = sp + (xt * tt) @ onehot

    w = 1.0 / jnp.square(st + W_EPS)
    inter = jnp.sum(w * sp, axis=-1) + EPS
    union = jnp.sum(w * (si + st), axis=-1) + EPS
    divided = 1.0 - 2.0 * inter / union
    return jnp.sum(divided)          # torch: mean(sum(divided)) == sum over B


def _gdl_reference(inp, tgt):
    """Pure-JAX mirror of the PyTorch forward (for verification)."""
    st = jnp.einsum("bwhc->bc", tgt)
    si = jnp.einsum("bwhc->bc", inp)
    sp = jnp.einsum("bwhc,bwhc->bc", inp, tgt)
    w = 1.0 / (st + W_EPS) ** 2
    inter = w * sp
    union = w * (si + st)
    divided = 1.0 - 2.0 * (jnp.sum(inter, axis=1) + EPS) / (jnp.sum(union, axis=1) + EPS)
    return jnp.mean(jnp.sum(divided))


if __name__ == "__main__":
    key = jax.random.PRNGKey(0)
    k1, k2 = jax.random.split(key)
    B, Wd, Hd, C = 2, 16, 16, 4
    # "bwhc" inputs; non-negative values (probability-like maps).
    inp = jax.random.uniform(k1, (B, Wd, Hd, C), dtype=jnp.float32)
    tgt = jax.random.uniform(k2, (B, Wd, Hd, C), dtype=jnp.float32)

    loss_fn = jax.jit(gdl_loss)
    out = jax.block_until_ready(loss_fn(inp, tgt))

    ref = jax.block_until_ready(_gdl_reference(inp, tgt))
    assert jnp.allclose(out, ref, rtol=1e-5, atol=1e-5), (out, ref)

    print("KERNEL_OK")
</pallas_src>

<mosaic_0001>
module attributes {stable_mosaic.version = 11 : i64} {
  func.func @_gdl_sums_kernel(%arg0: i32, %arg1: i32, %arg2: memref<1x8x128xf32, #tpu.memory_space<vmem>>, %arg3: memref<1x8x128xf32, #tpu.memory_space<vmem>>, %arg4: memref<1x3x8x128xf32, #tpu.memory_space<vmem>>) attributes {dimension_semantics = [#tpu.dimension_semantics<parallel>, #tpu.dimension_semantics<arbitrary>], iteration_bounds = array<i64: 2, 1>, scalar_prefetch = 0 : i64, scratch_operands = 0 : i64, tpu.core_type = #tpu.core_type<tc>, window_params = [{transform_indices = @transform_0, window_bounds = array<i64: 1, 8, 128>}, {transform_indices = @transform_1, window_bounds = array<i64: 1, 8, 128>}, {transform_indices = @transform_2, window_bounds = array<i64: 1, 3, 8, 128>}]} {
    %c0_i32 = arith.constant 0 : i32
    %0 = arith.cmpi eq, %arg1, %c0_i32 : i32
    %1 = arith.extui %0 : i1 to i32
    %c0_i32_0 = arith.constant 0 : i32
    %2 = arith.cmpi ne, %1, %c0_i32_0 : i32
    scf.if %2 {
      %cst_27 = arith.constant 0.000000e+00 : f32
      %34 = vector.broadcast %cst_27 : f32 to vector<1x3x8x128xf32>
      %c0_28 = arith.constant 0 : index
      %c0_29 = arith.constant 0 : index
      %c0_30 = arith.constant 0 : index
      %c0_31 = arith.constant 0 : index
      %35 = vector.load %arg4[%c0_28, %c0_29, %c0_30, %c0_31] : memref<1x3x8x128xf32, #tpu.memory_space<vmem>>, vector<1x3x8x128xf32>
      tpu.vector_store %arg4[%c0_28, %c0_29, %c0_30, %c0_31], %34 {strides = array<i32>} : memref<1x3x8x128xf32, #tpu.memory_space<vmem>>, vector<1x3x8x128xf32>,
    } else {
    }
    %cst = arith.constant 0.000000e+00 : f32
    %3 = vector.broadcast %cst : f32 to vector<8x128xf32>
    %c0_i32_1 = arith.constant 0 : i32
    %c8_i32 = arith.constant 8 : i32
    %4 = arith.muli %c0_i32_1, %c8_i32 : i32
    %5 = tpu.assume_multiple %4, 8 : i32
    %c0 = arith.constant 0 : index
    %6 = arith.index_cast %5 : i32 to index
    %c0_2 = arith.constant 0 : index
    %7 = vector.load %arg2[%c0, %6, %c0_2] : memref<1x8x128xf32, #tpu.memory_space<vmem>>, vector<1x8x128xf32>
    %8 = vector.shape_cast %7 : vector<1x8x128xf32> to vector<8x128xf32>
    %c0_3 = arith.constant 0 : index
    %9 = arith.index_cast %5 : i32 to index
    %c0_4 = arith.constant 0 : index
    %10 = vector.load %arg3[%c0_3, %9, %c0_4] : memref<1x8x128xf32, #tpu.memory_space<vmem>>, vector<1x8x128xf32>
    %11 = vector.shape_cast %10 : vector<1x8x128xf32> to vector<8x128xf32>
    %12 = arith.addf %3, %11 : vector<8x128xf32>
    %13 = arith.addf %3, %8 : vector<8x128xf32>
    %14 = arith.mulf %8, %11 : vector<8x128xf32>
    %15 = arith.addf %3, %14 : vector<8x128xf32>
    %c1_i32 = arith.constant 1 : i32
    %c0_5 = arith.constant 0 : index
    %c0_6 = arith.constant 0 : index
    %c0_7 = arith.constant 0 : index
    %c0_8 = arith.constant 0 : index
    %16 = vector.load %arg4[%c0_5, %c0_6, %c0_7, %c0_8] : memref<1x3x8x128xf32, #tpu.memory_space<vmem>>, vector<1x1x8x128xf32>
    %17 = vector.shape_cast %16 : vector<1x1x8x128xf32> to vector<8x128xf32>
    %18 = arith.addf %17, %12 : vector<8x128xf32>
    %c0_9 = arith.constant 0 : index
    %c0_10 = arith.constant 0 : index
    %c0_11 = arith.constant 0 : index
    %c0_12 = arith.constant 0 : index
    %19 = vector.load %arg4[%c0_9, %c0_10, %c0_11, %c0_12] : memref<1x3x8x128xf32, #tpu.memory_space<vmem>>, vector<1x1x8x128xf32>
    %20 = vector.shape_cast %19 : vector<1x1x8x128xf32> to vector<8x128xf32>
    %21 = vector.shape_cast %18 : vector<8x128xf32> to vector<1x1x8x128xf32>
    tpu.vector_store %arg4[%c0_9, %c0_10, %c0_11, %c0_12], %21 {strides = array<i32>} : memref<1x3x8x128xf32, #tpu.memory_space<vmem>>, vector<1x1x8x128xf32>,
    %c0_13 = arith.constant 0 : index
    %c1 = arith.constant 1 : index
    %c0_14 = arith.constant 0 : index
    %c0_15 = arith.constant 0 : index
    %22 = vector.load %arg4[%c0_13, %c1, %c0_14, %c0_15] : memref<1x3x8x128xf32, #tpu.memory_space<vmem>>, vector<1x1x8x128xf32>
    %23 = vector.shape_cast %22 : vector<1x1x8x128xf32> to vector<8x128xf32>
    %24 = arith.addf %23, %13 : vector<8x128xf32>
    %c0_16 = arith.constant 0 : index
    %c1_17 = arith.constant 1 : index
    %c0_18 = arith.constant 0 : index
    %c0_19 = arith.constant 0 : index
    %25 = vector.load %arg4[%c0_16, %c1_17, %c0_18, %c0_19] : memref<1x3x8x128xf32, #tpu.memory_space<vmem>>, vector<1x1x8x128xf32>
    %26 = vector.shape_cast %25 : vector<1x1x8x128xf32> to vector<8x128xf32>
    %27 = vector.shape_cast %24 : vector<8x128xf32> to vector<1x1x8x128xf32>
    tpu.vector_store %arg4[%c0_16, %c1_17, %c0_18, %c0_19], %27 {strides = array<i32>} : memref<1x3x8x128xf32, #tpu.memory_space<vmem>>, vector<1x1x8x128xf32>,
    %c0_20 = arith.constant 0 : index
    %c2 = arith.constant 2 : index
    %c0_21 = arith.constant 0 : index
    %c0_22 = arith.constant 0 : index
    %28 = vector.load %arg4[%c0_20, %c2, %c0_21, %c0_22] : memref<1x3x8x128xf32, #tpu.memory_space<vmem>>, vector<1x1x8x128xf32>
    %29 = vector.shape_cast %28 : vector<1x1x8x128xf32> to vector<8x128xf32>
    %30 = arith.addf %29, %15 : vector<8x128xf32>
    %c0_23 = arith.constant 0 : index
    %c2_24 = arith.constant 2 : index
    %c0_25 = arith.constant 0 : index
    %c0_26 = arith.constant 0 : index
    %31 = vector.load %arg4[%c0_23, %c2_24, %c0_25, %c0_26] : memref<1x3x8x128xf32, #tpu.memory_space<vmem>>, vector<1x1x8x128xf32>
    %32 = vector.shape_cast %31 : vector<1x1x8x128xf32> to vector<8x128xf32>
    %33 = vector.shape_cast %30 : vector<8x128xf32> to vector<1x1x8x128xf32>
    tpu.vector_store %arg4[%c0_23, %c2_24, %c0_25, %c0_26], %33 {strides = array<i32>} : memref<1x3x8x128xf32, #tpu.memory_space<vmem>>, vector<1x1x8x128xf32>,
    return
  }
  func.func @transform_0(%arg0: i32, %arg1: i32) -> (i32, i32, i32) {
    %c0_i32 = arith.constant 0 : i32
    %c0_i32_0 = arith.constant 0 : i32
    return %arg0, %arg1, %c0_i32 : i32, i32, i32
  }
  func.func @transform_1(%arg0: i32, %arg1: i32) -> (i32, i32, i32) {
    %c0_i32 = arith.constant 0 : i32
    %c0_i32_0 = arith.constant 0 : i32
    return %arg0, %arg1, %c0_i32 : i32, i32, i32
  }
  func.func @transform_2(%arg0: i32, %arg1: i32) -> (i32, i32, i32, i32) {
    %c0_i32 = arith.constant 0 : i32
    %c0_i32_0 = arith.constant 0 : i32
    %c0_i32_1 = arith.constant 0 : i32
    %c0_i32_2 = arith.constant 0 : i32
    return %arg0, %c0_i32, %c0_i32_0, %c0_i32_1 : i32, i32, i32, i32
  }
}

</mosaic_0001>

<bundles_post_ra>
// kernel: gdl_loss.1
= control target key start
LH: loop header
LB: loop body
LE: loop exit
PB: predicated region body
PF: predicated region fallthrough
CT: control target
= control target key end

     0   :  { %s376_s9 = smov 0   ;;  %s378_s10 = smov 0   ;;  %s400_s0 = inlined_call_operand.vmem [shape: f32[2,8,128], index: 0, kind: input, shape index: {}]   ;;  %s401_s1 = inlined_call_operand.vmem [shape: f32[2,8,128], index: 1, kind: input, shape index: {}]   ;;  %s402_s2 = inlined_call_operand.vmem [shape: f32[2,3,8,128], index: 2, kind: output, shape index: {}]  }
   0x1   :  { %s380_s11 = smov 0  }
   0x2 LB: > { %s24_s12 = sadd.s32 1, %s355_s10  ;;  %p301_p0 = scmp.ge.s32.totalorder %s359_s11, 1  ;;  %s359_s11 = sphi %s380_s11, %s12_s11   ;;  %s355_s10 = sphi %s378_s10, %s404_s10   ;;  %s351_s9 = sphi %s376_s9, %s403_s9  }
   0x3   : > { %p26_p1 = scmp.ge.s32.totalorder %s24_s12, 2  ;;  %p142_p2 = scmp.lt.s32.totalorder %s359_s11, 3 }
   0x5   : > { %s406_s12 = smov (%p26_p1, %s24_s12), 0  ;;  %p143_p3 = pnand %p301_p0, %p142_p2 }
   0x6   : > { %p173_p4 = scmp.lt.s32.totalorder (!%p143_p3), %s351_s9, 1 }
   0x7   : > { %146 = sbr.rel (%p143_p3) target bundleno = 20 (0x14), region = 28 }
   0xc   : > { %s408_s9 = smov (!%p173_p4, %s351_s9), 1 }
   0xd   : > { %s311_s13 = smul.u32 24, %s408_s9  ;;  %s302_s14 = sshll.u32 %s408_s9, 3 }
   0xe   : > { %s186_s17 = scalar_lea.vmem %s401_s1, %s302_s14  ;;  %s179_s20 = scalar_lea.vmem %s400_s0, %s302_s14 }
   0xf   : > { %s191_s23 = scalar_lea.vmem %s402_s2, %s311_s13  ;;  %v200_v0 = vld [vmem:[%s186_s17] sm:$0xff] }
  0x10   : > { %v199_v1 = vld [vmem:[%s179_s20] sm:$0xff]  ;;  %207 = vst [vmem:[%s191_s23] sm:$0xff] %v200_v0 }
  0x11   : > { %v203_v2 = vmul.f32 %v200_v0, %v199_v1  ;;  %306 = vst [vmem:[%s191_s23 + $0x8] sm:$0xff] %v199_v1 }
  0x13   : > { %308 = vst [vmem:[%s191_s23 + $0x10] sm:$0xff] %v203_v2 }
  0x14 PF: > { %s12_s11 = sadd.s32 1, %s359_s11   ;;  %s403_s9 = smov %s355_s10 }
  0x15   : > { %p9_p5 = scmp.ge.s32.totalorder %s12_s11, 4   ;;  %s404_s10 = smov %s406_s12 }
  0x17   :  { %11 = sbr.rel (!%p9_p5) target bundleno = 2 (0x2), region = 67 }

</bundles_post_ra>
